<compile_context>
chip_gen: v7x
topology: tpu7x:2x2x1
jax: 0.10.0
libtpu: 0.0.40
codegen_flags: <defaults>
</compile_context>

<pallas_src>
import jax
import jax.numpy as jnp
from jax.experimental import pallas as pl
from jax.experimental.pallas import tpu as pltpu


def _round_up(x, m):
    return ((x + m - 1) // m) * m


def _downsample2_kernel(xcol_ref, w_ref, b_ref, out_ref):
    """One (batch, L-tile) grid step.

    xcol_ref : (1, Kp, TILE_L)  im2col activations, tap-major rows (f32/bf16)
    w_ref    : (Cop, Kp)        conv weight, tap-major im2col layout (resident)
    b_ref    : (Cop, 1)         bias, f32 (resident)
    out_ref  : (1, Cop, TILE_L) f32 output tile
    """
    # Single MXU matmul over the whole K = 3*C contraction; f32 accumulate.
    y = jnp.dot(w_ref[...], xcol_ref[0], preferred_element_type=jnp.float32)
    out_ref[0] = (y + b_ref[...]).astype(out_ref.dtype)


def downsample2_forward(x, weight, bias, *, operand_dtype=jnp.float32,
                        max_tile_l=1024, vmem_budget_bytes=24 * 1024 * 1024):
    """Conv1d(dim, dim, kernel_size=3, stride=2, padding=1) forward.

    x: (B, C, L); weight: (C_out, C_in, 3); bias: (C_out,).
    Returns (B, C_out, L_out) f32 with L_out = (L - 1) // 2 + 1.

    operand_dtype: jnp.float32 for exact PyTorch parity, or jnp.bfloat16 for
    the v6e/v7x fast path (bf16 MXU operands, f32 accumulation/bias/output).
    """
    B, C, L = x.shape
    C_out, C_in, K = weight.shape
    assert C_in == C and K == 3, "Downsample2 uses Conv1d(dim, dim, 3, 2, 1)"
    L_out = (L + 2 - 3) // 2 + 1

    sub = 16 if operand_dtype == jnp.bfloat16 else 8
    Kp = _round_up(3 * C, sub)          # contraction rows, sublane-aligned
    Cop = _round_up(C_out, sub)         # output channels, sublane-aligned

    # ---- wrapper-side im2col (layout plumbing, done once) ------------------
    x_pad = jnp.pad(x.astype(jnp.float32), ((0, 0), (0, 0), (1, 1)))
    tap0 = x_pad[:, :, 0::2][:, :, :L_out]        # x_pad[.., 2t]
    tap1 = x_pad[:, :, 1::2][:, :, :L_out]        # x_pad[.., 2t+1]
    tap2 = x_pad[:, :, 2::2][:, :, :L_out]        # x_pad[.., 2t+2]
    xcol = jnp.concatenate([tap0, tap1, tap2], axis=1)      # (B, 3C, L_out)

    # ---- tile-size selection (keep double-buffered tiles in VMEM budget) ---
    in_size = jnp.dtype(operand_dtype).itemsize
    w_bytes = Cop * Kp * in_size
    per_col = 2 * (Kp * in_size + Cop * 4)    # dbl-buffered in+out per column
    tile_l = min(max_tile_l, _round_up(L_out, 128))
    while tile_l > 128 and tile_l * per_col + w_bytes > vmem_budget_bytes:
        tile_l -= 128
    L_pad = _round_up(L_out, tile_l)
    n_l_tiles = L_pad // tile_l

    xcol = jnp.pad(xcol, ((0, 0), (0, Kp - 3 * C), (0, L_pad - L_out)))
    xcol = xcol.astype(operand_dtype)

    # Torch weight (C_out, C_in, 3) -> tap-major im2col weight (Cop, Kp).
    w_flat = jnp.transpose(weight.astype(jnp.float32), (0, 2, 1)).reshape(
        C_out, 3 * C)
    w_flat = jnp.pad(w_flat, ((0, Cop - C_out), (0, Kp - 3 * C)))
    w_flat = w_flat.astype(operand_dtype)
    b = jnp.pad(bias.astype(jnp.float32), (0, Cop - C_out)).reshape(Cop, 1)

    out = pl.pallas_call(
        _downsample2_kernel,
        out_shape=jax.ShapeDtypeStruct((B, Cop, L_pad), jnp.float32),
        grid=(B, n_l_tiles),
        in_specs=[
            pl.BlockSpec((1, Kp, tile_l), lambda bi, li: (bi, 0, li)),
            pl.BlockSpec((Cop, Kp), lambda bi, li: (0, 0)),      # resident
            pl.BlockSpec((Cop, 1), lambda bi, li: (0, 0)),       # resident
        ],
        out_specs=pl.BlockSpec((1, Cop, tile_l), lambda bi, li: (bi, 0, li)),
        compiler_params=pltpu.CompilerParams(
            dimension_semantics=("parallel", "parallel")),
    )(xcol, w_flat, b)

    return out[:, :C_out, :L_out]


def _reference(x, weight, bias):
    # Pure-JAX reference: Conv1d(dim, dim, 3, stride=2, padding=1).
    y = jax.lax.conv_general_dilated(
        x.astype(jnp.float32), weight.astype(jnp.float32),
        window_strides=(2,), padding=((1, 1),),
        dimension_numbers=("NCH", "OIH", "NCH"))
    return y + bias.astype(jnp.float32)[None, :, None]


if __name__ == "__main__":
    B, dim, L = 2, 4, 16

    key = jax.random.PRNGKey(0)
    kx, kw, kb = jax.random.split(key, 3)
    x = jax.random.normal(kx, (B, dim, L), jnp.float32)
    weight = 0.1 * jax.random.normal(kw, (dim, dim, 3), jnp.float32)
    bias = 0.1 * jax.random.normal(kb, (dim,), jnp.float32)

    L_out = (L + 2 - 3) // 2 + 1
    ref = _reference(x, weight, bias)

    # Exact-parity f32 path.
    out = downsample2_forward(x, weight, bias)
    out = jax.block_until_ready(out)
    assert out.shape == (B, dim, L_out)
    assert jnp.allclose(out, ref, atol=1e-5, rtol=1e-5), (
        "f32 path mismatch vs conv reference")

    # bf16-operand fast path (v6e/v7x): looser tolerance (input rounding only).
    out_bf16 = downsample2_forward(x, weight, bias,
                                   operand_dtype=jnp.bfloat16)
    out_bf16 = jax.block_until_ready(out_bf16)
    assert out_bf16.shape == (B, dim, L_out)
    assert jnp.allclose(out_bf16, ref, atol=2e-2, rtol=2e-2), (
        "bf16 path mismatch vs conv reference")

    print("KERNEL_OK")
</pallas_src>

<mosaic_0001>
module attributes {stable_mosaic.version = 11 : i64} {
  func.func @_downsample2_kernel(%arg0: i32, %arg1: i32, %arg2: memref<1x16x128xf32, #tpu.memory_space<vmem>>, %arg3: memref<8x16xf32, #tpu.memory_space<vmem>>, %arg4: memref<8x1xf32, #tpu.memory_space<vmem>>, %arg5: memref<1x8x128xf32, #tpu.memory_space<vmem>>) attributes {dimension_semantics = [#tpu.dimension_semantics<parallel>, #tpu.dimension_semantics<parallel>], iteration_bounds = array<i64: 2, 1>, scalar_prefetch = 0 : i64, scratch_operands = 0 : i64, tpu.core_type = #tpu.core_type<tc>, window_params = [{transform_indices = @transform_0, window_bounds = array<i64: 1, 16, 128>}, {pipeline_mode = #tpu.pipeline_mode<synchronous>, transform_indices = @transform_1, window_bounds = array<i64: 8, 16>}, {pipeline_mode = #tpu.pipeline_mode<synchronous>, transform_indices = @transform_2, window_bounds = array<i64: 8, 1>}, {transform_indices = @transform_3, window_bounds = array<i64: 1, 8, 128>}]} {
    %c0 = arith.constant 0 : index
    %c0_0 = arith.constant 0 : index
    %0 = vector.load %arg3[%c0, %c0_0] : memref<8x16xf32, #tpu.memory_space<vmem>>, vector<8x16xf32>
    %c0_1 = arith.constant 0 : index
    %c0_2 = arith.constant 0 : index
    %c0_3 = arith.constant 0 : index
    %1 = vector.load %arg2[%c0_1, %c0_2, %c0_3] : memref<1x16x128xf32, #tpu.memory_space<vmem>>, vector<1x16x128xf32>
    %2 = vector.shape_cast %1 : vector<1x16x128xf32> to vector<16x128xf32>
    %cst = arith.constant dense<0.000000e+00> : vector<8x128xf32>
    %3 = tpu.matmul %0, %2, %cst {dimension_numbers = #tpu.dot_dimension_numbers<[1], [0], [0], [1], [0, 0, 1, 1], [], []>} : vector<8x16xf32>, vector<16x128xf32>, vector<8x128xf32> -> vector<8x128xf32>
    %c0_4 = arith.constant 0 : index
    %c0_5 = arith.constant 0 : index
    %4 = vector.load %arg4[%c0_4, %c0_5] : memref<8x1xf32, #tpu.memory_space<vmem>>, vector<8x1xf32>
    %5 = vector.broadcast %4 : vector<8x1xf32> to vector<8x128xf32>
    %6 = arith.addf %3, %5 : vector<8x128xf32>
    %c0_6 = arith.constant 0 : index
    %c0_7 = arith.constant 0 : index
    %c0_8 = arith.constant 0 : index
    %7 = vector.load %arg5[%c0_6, %c0_7, %c0_8] : memref<1x8x128xf32, #tpu.memory_space<vmem>>, vector<1x8x128xf32>
    %8 = vector.shape_cast %7 : vector<1x8x128xf32> to vector<8x128xf32>
    %9 = vector.shape_cast %6 : vector<8x128xf32> to vector<1x8x128xf32>
    tpu.vector_store %arg5[%c0_6, %c0_7, %c0_8], %9 {strides = array<i32>} : memref<1x8x128xf32, #tpu.memory_space<vmem>>, vector<1x8x128xf32>,
    return
  }
  func.func @transform_0(%arg0: i32, %arg1: i32) -> (i32, i32, i32) {
    %c0_i32 = arith.constant 0 : i32
    %c0_i32_0 = arith.constant 0 : i32
    return %arg0, %c0_i32, %arg1 : i32, i32, i32
  }
  func.func @transform_1(%arg0: i32, %arg1: i32) -> (i32, i32) {
    %c0_i32 = arith.constant 0 : i32
    %c0_i32_0 = arith.constant 0 : i32
    %c0_i32_1 = arith.constant 0 : i32
    return %c0_i32, %c0_i32_0 : i32, i32
  }
  func.func @transform_2(%arg0: i32, %arg1: i32) -> (i32, i32) {
    %c0_i32 = arith.constant 0 : i32
    %c0_i32_0 = arith.constant 0 : i32
    %c0_i32_1 = arith.constant 0 : i32
    return %c0_i32, %c0_i32_0 : i32, i32
  }
  func.func @transform_3(%arg0: i32, %arg1: i32) -> (i32, i32, i32) {
    %c0_i32 = arith.constant 0 : i32
    %c0_i32_0 = arith.constant 0 : i32
    return %arg0, %c0_i32, %arg1 : i32, i32, i32
  }
}

</mosaic_0001>

<bundles_post_ra>
// kernel: tpu_custom_call.1
= control target key start
LH: loop header
LB: loop body
LE: loop exit
PB: predicated region body
PF: predicated region fallthrough
CT: control target
= control target key end

     0   :  { %8 = vsyncpa [#allocation3], 0  ;;  %s806_s0 = inlined_call_operand.hbm [shape: f32[2,16,128], index: 0, kind: input, shape index: {}]   ;;  %s807_s1 = inlined_call_operand.vmem [shape: f32[8,16], index: 1, kind: input, shape index: {}]   ;;  %s808_s2 = inlined_call_operand.vmem [shape: f32[8,1], index: 2, kind: input, shape index: {}]   ;;  %s809_s3 = inlined_call_operand.hbm [shape: f32[2,8,128], index: 3, kind: output, shape index: {}]  }
   0x1   :  { %10 = vsyncpa [#allocation3 + $0x1], 0 }
   0x2   :  { %11 = vsyncpa [#allocation4], 0 }
   0x3   :  { %13 = vsyncpa [#allocation4 + $0x1], 0  ;;  %s626_s12 = smov 0   ;;  %s628_s13 = smov 0  }
   0x4   :  { %s630_s14 = smov 0   ;;  %s632_s15 = smov 0  }
   0x5   :  { %s634_s16 = smov 0   ;;  %s636_s17 = smov 0  }
   0x6 LB: > { %s386_s18 = sadd.s32 4294967295, %s596_s17   ;;  %s387_s19 = sadd.s32 4294967294, %s596_s17   ;;  %s596_s17 = sphi %s636_s17, %s19_s17   ;;  %s592_s16 = sphi %s634_s16, %s824_s16   ;;  %s588_s15 = sphi %s632_s15, %s823_s15   ;;  %s584_s14 = sphi %s630_s14, %s822_s14   ;;  %s580_s13 = sphi %s628_s13, %s821_s13   ;;  %s576_s12 = sphi %s626_s12, %s820_s12  }
   0x7   : > { %s31_s20 = sadd.s32 1, %s592_s16  ;;  %s40_s21 = sadd.s32 1, %s584_s14 }
   0x8   : > { %p33_p0 = scmp.ge.s32.totalorder %s31_s20, 2  ;;  %p47_p1 = scmp.ne.s32.totalorder %s584_s14, %s580_s13 }
   0x9   : > { %p48_p2 = scmp.eq.s32.totalorder %s596_s17, 0  ;;  %p53_p3 = scmp.ne.s32.totalorder %s580_s13, %s576_s12 }
   0xa   : > { %s826_s20 = smov (%p33_p0, %s31_s20), 0  ;;  %p54_p5 = scmp.eq.s32.totalorder %s386_s18, 0 }
   0xb   : > { %p667_p4 = por %p48_p2, %p47_p1  ;;  %s35_s23 = ssub.s32 %s592_s16, %s826_s20 }
   0xc   : > { %p121_p6 = scmp.eq.s32.totalorder %s386_s18, 1  ;;  %p38_p7 = scmp.eq.s32.totalorder %s35_s23, 0 }
   0xd   : > { %p673_p8 = por %p54_p5, %p53_p3  ;;  %p127_p10 = scmp.eq.s32.totalorder %s387_s19, 1 }
   0xe   : > { %p677_p9 = por %p121_p6, %p47_p1  ;;  %p427_p13 = scmp.lt.s32.totalorder %s596_s17, 2 }
   0xf   : > { %s682_s26 = scalar_select %p38_p7, %s584_s14, %s40_s21  }
  0x10   : > { %s813_s25 = scalar_select %p677_p9, 1, 0 }
  0x11   : > { %p684_p11 = por %p127_p10, %p53_p3  ;;  %s153_s28 = sand.u32 1, %s584_s14  }
  0x12   : > { %s390_s29 = sshll.u32 %s153_s28, 4  ;;  %s401_s30 = sshll.u32 %s592_s16, 8 }
  0x13   : > { %s814_s27 = scalar_select %p684_p11, 1, 0 }
  0x14   : > { %s695_s6 = scalar_lea.hbm %s806_s0, %s401_s30  ;;  %s157_s7 = scalar_lea.vmem [#allocation2], %s390_s29 }
  0x15   : > { %s165_s8 = sshll.u32 %s157_s7, 4  ;;  %p701_p0 = pnand %p427_p13, %p667_p4  ;;  %s697_s8 = int_to_ptr.vmem [resolvable:$true] %s165_s8 }
  0x16   : > { %s706_s10 = scalar_lea.sflag [#allocation3], %s153_s28  ;;  %s484_s11 = scalar_lea.hbm %s695_s6, 256 }
  0x17   : > { %p485_p2 = scmp.ne.s32.totalorder %s695_s6, %s484_s11  ;;  %p486_p3 = pneg %p701_p0 }
  0x18   : > { %s489_s21 = scalar_lea.hbm %s806_s0, 512  ;;  %p490_p4 = scmp.lt.u32.totalorder %s695_s6, %s806_s0 }
  0x19   : > { %p487_p5 = pnand %p486_p3, %p485_p2  ;;  %p491_p7 = scmp.lt.u32.totalorder %s489_s21, %s484_s11 }
  0x1a   : > { %p493_p13 = scmp.lt.u32.totalorder %s484_s11, %s695_s6 }
  0x1b   : > { %p488_p6 = pneg %p487_p5  ;;  %p492_p10 = por %p491_p7, %p490_p4 }
  0x1d   : > { %p494_p12 = por %p493_p13, %p492_p10 }
  0x1f   : > { %p495_p1 = pnand %p494_p12, %p488_p6 }
  0x21   : > { %498 = shalt.err (!%p495_p1)
}
  0x22   : > { %s499_s28 = scalar_lea.vmem %s697_s8, 256  ;;  %s598_s29 = smov [#allocation2]  }
  0x23   : > { %p500_p2 = scmp.ne.s32.totalorder %s697_s8, %s499_s28  ;;  %s504_s30 = sshll.u32 %s598_s29, 4  ;;  %s505_s30 = int_to_ptr.vmem [resolvable:$false] %s504_s30 }
  0x24   : > { %s506_s4 = scalar_lea.vmem %s505_s30, 512  ;;  %p507_p9 = scmp.lt.s32.totalorder %s697_s8, %s505_s30 }
  0x25   : > { %p502_p5 = pnand %p500_p2, %p486_p3  ;;  %p508_p4 = scmp.lt.s32.totalorder %s506_s4, %s499_s28 }
  0x27   : > { %p503_p11 = pneg %p502_p5  ;;  %p509_p7 = por %p508_p4, %p507_p9 }
  0x29   : > { %p510_p10 = pnand %p509_p7, %p503_p11 }
  0x2b   : > { %513 = shalt.err (!%p510_p10)
}
  0x2c   : > { %s599_s5 = smov 128   ;;  %s600_s7 = smov 8  }
  0x2d   : > { %422 = dma.hbm_to_vmem [thread:$0]  (!%p701_p0), %s695_s6, 256, %s697_s8, %s706_s10, %s599_s5, %s599_s5, %s600_s7  }
  0x2e   : > { %p173_p12 = scmp.lt.s32.totalorder %s596_s17, 3  ;;  %p816_p1 = scmp.ge.s32.totalorder %s596_s17, 1 }
  0x30   : > { %p174_p3 = pnand %p816_p1, %p173_p12 }
  0x31   : > { %s738_s11 = sand.u32 (!%p174_p3), 1, %s580_s13  }
  0x32   : > { %177 = sbr.rel (%p174_p3) target bundleno = 293 (0x125), region = 32  ;;  %s394_s18 = sshll.u32 (!%p174_p3), %s738_s11, 4 }
  0x33   : > { %s180_s19 = scalar_lea.sflag (!%p174_p3), [#allocation3], %s738_s11  ;;  %s183_s21 = scalar_lea.vmem (!%p174_p3), [#allocation2], %s394_s18 }
  0x39   : > { %567 = dma.done.wait (%p673_p8), %s180_s19, 256  }
  0x3a   : > { %569 = vsyncadd (%p673_p8), %s180_s19, 4294967040  ;;  %v601_v0 = vmov 0.0|0.0   ;;  %vm602_vm0 = vmmov 0   ;;  %v603_v1 = vmov 0.0   ;;  %v604_v2 = vmov 0   ;;  %v207_v3 = vld [vmem:[%s183_s21] sm:$0xff] }
  0x3b   : > { %412 = vmatprep.subr.bf16.mxu0 %v601_v0  ;;  %409 = vmatprep.mubr.msk.f32.mxu0 %vm602_vm0, %v603_v1  ;;  %v208_v4 = vld [vmem:[%s183_s21 + $0x8] sm:$0xff]  ;;  %v209_v6 = vld [vmem:[%s808_s2] sm:$0xff]  ;;  %vm215_vm1 = vcmask 130048   ;;  %s395_s10 = sshll.u32 %s738_s11, 3  ;;  %s398_s22 = sshll.u32 %s588_s15, 7 }
  0x3c   : > { %483 = vset.pattern.permute.xlu0 %v604_v2  ;;  %v413_v5 = vpack.c.bf16 %v208_v4, %v207_v3  ;;  %v206_v7 = vld [vmem:[%s807_s1] sm:$0xff]  ;;  %s205_s23 = scalar_lea.vmem [#allocation5], %s395_s10  ;;  %s757_s4 = scalar_lea.hbm %s809_s3, %s398_s22 }
  0x3d   : > { %212 = vperm.xlu0 %483, %v209_v6   ;;  %s305_s28 = sshll.u32 %s205_s23, 4  ;;  %s291_s5 = scalar_lea.sflag [#allocation4], %s738_s11  ;;  %s759_s28 = int_to_ptr.vmem [resolvable:$true] %s305_s28 }
  0x3e   : > { %414 = vmatpush3.bf16.msra.mxu0 %v413_v5  ;;  %s514_s7 = scalar_lea.vmem %s759_s28, 128  ;;  %p817_p9 = scmp.ne.s32.totalorder %s813_s25, 0 }
  0x3f   : > { %p515_p8 = scmp.ne.s32.totalorder %s759_s28, %s514_s7  ;;  %s605_s15 = smov [#allocation5]  }
  0x40   : > { %s518_s18 = sshll.u32 %s605_s15, 4  ;;  %s519_s18 = int_to_ptr.vmem [resolvable:$false] %s518_s18 }
  0x41   : > { %410 = vmatmul.mubr.msk.f32.vlgmr.msra.gmra.mrb[0].mxu0 %vm215_vm1, %v206_v7  ;;  %p516_p11 = pnand %p515_p8, %p817_p9  ;;  %s520_s19 = scalar_lea.vmem %s519_s18, 256 }
  0x42   : > { %p521_p6 = scmp.lt.s32.totalorder %s759_s28, %s519_s18  ;;  %p522_p13 = scmp.lt.s32.totalorder %s520_s19, %s514_s7 }
  0x43   : > { %p517_p0 = pneg %p516_p11 }
  0x44   : > { %p523_p2 = por %p522_p13, %p521_p6 }
  0x46   : > { %p524_p5 = pnand %p523_p2, %p517_p0 }
  0xbc   : > { %v213_v8 = vpop.permute.xlu0 %212 }
 0x114   : > { %v285_v9 = vpop.f32.mrb[0].mxu0 }
 0x115   : > { %v286_v10 = vadd.f32 %v285_v9, %v213_v8  ;;  %v411_v11 = vpop.f32.mrb[1].mxu0 }
 0x117   : > { %289 = vst [vmem:[%s205_s23] sm:$0xff] %v286_v10 }
 0x118   : > { %527 = shalt.err (!%p524_p5)
}
 0x119   : > { %s528_s11 = scalar_lea.hbm %s757_s4, 128  ;;  %s532_s8 = scalar_lea.hbm %s809_s3, 256 }
 0x11a   : > { %p529_p4 = scmp.ne.s32.totalorder %s757_s4, %s528_s11  ;;  %p533_p12 = scmp.lt.u32.totalorder %s757_s4, %s809_s3 }
 0x11b   : > { %p534_p1 = scmp.lt.u32.totalorder %s532_s8, %s528_s11  ;;  %p536_p8 = scmp.lt.u32.totalorder %s528_s11, %s757_s4 }
 0x11c   : > { %p530_p7 = pnand %p529_p4, %p817_p9 }
 0x11d   : > { %p535_p3 = por %p534_p1, %p533_p12 }
 0x11e   : > { %p531_p10 = pneg %p530_p7 }
 0x11f   : > { %p537_p11 = por %p536_p8, %p535_p3 }
 0x121   : > { %p538_p0 = pnand %p537_p11, %p531_p10 }
 0x123   : > { %541 = shalt.err (!%p538_p0)
}
 0x124   : > { %417 = dma.vmem_to_hbm [thread:$0]  (%p817_p9), %s759_s28, 128, %s757_s4, %s291_s5  }
 0x125 PF: > { %s317_s10 = sand.u32 1, %s576_s12   ;;  %p818_p6 = scmp.ne.s32.totalorder %s814_s27, 0 }
 0x126   : > { %p819_p13 = scmp.ge.s32.totalorder %s596_s17, 2  ;;  %s318_s22 = scalar_lea.sflag [#allocation4], %s317_s10 }
 0x128   : > { %p424_p2 = pnand %p819_p13, %p818_p6 }
 0x12a   : > { %571 = dma.done.wait (!%p424_p2), %s318_s22, 128  }
 0x12b   : > { %573 = vsyncadd (!%p424_p2), %s318_s22, 4294967168  ;;  %s19_s17 = sadd.s32 1, %s596_s17   ;;  %s820_s12 = smov %s580_s13 }
 0x12c   : > { %p16_p5 = scmp.ge.s32.totalorder %s19_s17, 4   ;;  %s821_s13 = smov %s584_s14 }
 0x12d   : > { %s822_s14 = smov %s682_s26  ;;  %s823_s15 = smov %s592_s16 }
 0x12e   : > { %s824_s16 = smov %s826_s20  ;;  %18 = sbr.rel (!%p16_p5) target bundleno = 6 (0x6), region = 77 }
 0x135   :  { %323 = vsyncpa [#allocation3], 1 }
 0x136   :  { %325 = vsyncpa [#allocation3 + $0x1], 1 }
 0x137   :  { %326 = vsyncpa [#allocation4], 1 }
 0x138   :  { %328 = vsyncpa [#allocation4 + $0x1], 1 }

</bundles_post_ra>
